<compile_context>
chip_gen: v6e
topology: v6e:2x2x1
jax: 0.10.0
libtpu: 0.0.40
codegen_flags: <defaults>
</compile_context>

<pallas_src>
import numpy as np
import jax
import jax.numpy as jnp
from jax.experimental import pallas as pl
from jax.experimental.pallas import tpu as pltpu


def _kaiming_normal_conv1d(key, out_c: int, in_c: int, k: int,
                           negative_slope: float = 0.01) -> jnp.ndarray:
    """kaiming_normal_(mode='fan_in', nonlinearity='leaky_relu') for Conv1d."""
    fan_in = in_c * k
    gain = np.sqrt(2.0 / (1.0 + negative_slope ** 2))
    std = gain / np.sqrt(fan_in)
    return (std * jax.random.normal(key, (out_c, in_c, k))).astype(jnp.float32)


def _round_up(x: int, m: int) -> int:
    return ((x + m - 1) // m) * m


def _pick_block_rows(n_rows: int, row_in_vmem: int, row_out_vmem: int,
                     weight_vmem: int) -> int:
    """Row-block size for the flattened (B*L) row axis.

    Targets a ~4 MiB output block (=> 2048-8192 rows at production d_model) so
    the dominant HBM writeback DMA is long enough to approach roofline, while
    keeping the double-buffered working set 2*(in+out blocks) + 2*weight under a
    budget that is safe on v7x's 64 MiB physical VMEM (and trivially safe on
    v5e/v6e's 128 MiB).
    """
    target_out_block_bytes = 4 << 20          # ~4 MiB output tile per grid step
    working_set_budget = 40 << 20             # < 48 MiB usable on v7x
    rows = max(8, target_out_block_bytes // max(row_out_vmem, 1))
    max_rows = max(8, (working_set_budget - 2 * weight_vmem)
                   // (2 * (row_in_vmem + row_out_vmem)))
    rows = min(rows, max_rows, _round_up(n_rows, 8))  # never exceed the problem
    return int(max(8, (rows // 8) * 8))                # sublane multiple of 8


def _token_embed_gemm_kernel(xs_ref, w_ref, o_ref):
    # xs_ref: (TR, 3C) im2col rows (compute dtype)
    # w_ref:  (3C, Dp) fused conv weight (compute dtype), Dp multiple of 128
    # o_ref:  (TR, Dp) lane-dense output block
    # Pure GEMM + store: all circular-shift / concat / reshape relayout was
    # hoisted to the wrapper, so the hot loop has no VPU/XLU relayout work.
    o_ref[...] = jnp.dot(
        xs_ref[...], w_ref[...], preferred_element_type=jnp.float32
    ).astype(o_ref.dtype)


def token_embedding(x, conv_weight, *, compute_dtype=jnp.bfloat16,
                    out_dtype=None, block_rows=None):
    """TokenEmbedding forward.

    x: (B, L, C_in) float; conv_weight: (d_model, c_in, 3), torch Conv1d layout.
    Returns (B, L, d_model) in out_dtype (defaults to x.dtype).
    """
    B, L, C = x.shape
    D = conv_weight.shape[0]
    assert conv_weight.shape == (D, C, 3)
    if out_dtype is None:
        out_dtype = x.dtype

    # ---- im2col in the wrapper: row l holds [x[(l-1)%L], x[l], x[(l+1)%L]]
    # concatenated over channels.  Cheap relative to the D-wide output writeback.
    x_prev = jnp.roll(x, 1, axis=1)
    x_next = jnp.roll(x, -1, axis=1)
    xs = jnp.concatenate([x_prev, x, x_next], axis=-1)      # (B, L, 3C)
    xs = xs.reshape(B * L, 3 * C).astype(compute_dtype)     # cast ONCE, pre-dup

    # ---- fused weight: row (k*C + c) = conv_weight[:, c, k]; pad d_model to a
    # multiple of 128 so the dominant output store is unmasked / lane-dense.
    K = 3 * C
    Dp = _round_up(D, 128)
    w_fused = jnp.transpose(conv_weight, (2, 1, 0)).reshape(K, D)
    w_fused = w_fused.astype(compute_dtype)
    if Dp != D:
        w_fused = jnp.pad(w_fused, ((0, 0), (0, Dp - D)))

    in_sz = np.dtype(compute_dtype).itemsize
    out_sz = np.dtype(out_dtype).itemsize

    # VMEM footprints account for lane (128) / sublane padding of narrow dims.
    row_in_vmem = _round_up(K, 128) * in_sz
    row_out_vmem = Dp * out_sz
    weight_vmem = _round_up(K, 16) * Dp * in_sz

    R = B * L
    if block_rows is None:
        block_rows = _pick_block_rows(R, row_in_vmem, row_out_vmem, weight_vmem)
    block_rows = max(8, (block_rows // 8) * 8)

    # Pad the row axis so the grid is exact: works for any B*L (prime / tiny B
    # included) with no divisor search and no masked partial blocks.
    Rp = _round_up(R, block_rows)
    if Rp != R:
        xs = jnp.pad(xs, ((0, Rp - R), (0, 0)))
    grid_r = Rp // block_rows

    cost = pl.CostEstimate(
        flops=2 * Rp * K * Dp,
        transcendentals=0,
        bytes_accessed=Rp * K * in_sz + K * Dp * in_sz + Rp * Dp * out_sz,
    )

    # Double-buffered in/out blocks + (double-buffered, tiny) weight + headroom,
    # capped at 48 MiB so the limit is always safe against v7x's 64 MiB physical
    # VMEM while still allowing multi-MiB output blocks on every generation.
    footprint = 2 * block_rows * (row_in_vmem + row_out_vmem) + 2 * weight_vmem
    vmem_limit = int(min(48 << 20, max(16 << 20, footprint + (4 << 20))))

    in_specs = [
        pl.BlockSpec((block_rows, K), lambda r: (r, 0)),     # row block
        # Grid-invariant fused weight (K*Dp*in_sz bytes; ~3 KiB at demo sizes).
        # TODO(synk): at production C*D on v7x, pass pipeline_mode=pl.Buffered(1)
        # here to drop the pointless weight double-buffer and save VMEM.
        pl.BlockSpec((K, Dp), lambda r: (0, 0)),
    ]

    out_padded = pl.pallas_call(
        _token_embed_gemm_kernel,
        out_shape=jax.ShapeDtypeStruct((Rp, Dp), out_dtype),
        grid_spec=pltpu.PrefetchScalarGridSpec(
            num_scalar_prefetch=0,
            grid=(grid_r,),
            in_specs=in_specs,
            out_specs=pl.BlockSpec((block_rows, Dp), lambda r: (r, 0)),
        ),
        compiler_params=pltpu.CompilerParams(
            dimension_semantics=("parallel",),
            vmem_limit_bytes=vmem_limit,
        ),
        cost_estimate=cost,
    )(xs, w_fused)

    return out_padded[:R, :D].reshape(B, L, D)


def _reference(x, conv_weight):
    """Plain-JAX reference of the PyTorch TokenEmbedding forward."""
    x_prev = jnp.roll(x, 1, axis=1)
    x_next = jnp.roll(x, -1, axis=1)
    w0 = conv_weight[:, :, 0].T
    w1 = conv_weight[:, :, 1].T
    w2 = conv_weight[:, :, 2].T
    return (jnp.einsum("blc,cd->bld", x_prev, w0, precision="highest")
            + jnp.einsum("blc,cd->bld", x, w1, precision="highest")
            + jnp.einsum("blc,cd->bld", x_next, w2, precision="highest"))


if __name__ == "__main__":
    # Small demo shapes; d_model=128 exercises the lane-dense fast path.
    B, L, C_IN, D_MODEL = 2, 16, 4, 128

    key = jax.random.PRNGKey(0)
    kx, kw, kw2 = jax.random.split(key, 3)
    x = jax.random.normal(kx, (B, L, C_IN), dtype=jnp.float32)
    conv_weight = _kaiming_normal_conv1d(kw, D_MODEL, C_IN, 3)

    ref = jax.block_until_ready(_reference(x, conv_weight))

    # Full-f32 fidelity path.
    out_f32 = jax.block_until_ready(
        token_embedding(x, conv_weight, compute_dtype=jnp.float32))
    assert out_f32.shape == (B, L, D_MODEL)
    np.testing.assert_allclose(np.asarray(out_f32), np.asarray(ref),
                               rtol=2e-2, atol=2e-2)

    # Default bf16-MXU compute path (perf path), f32 accumulation + f32 output.
    out_bf16c = jax.block_until_ready(token_embedding(x, conv_weight))
    assert out_bf16c.shape == (B, L, D_MODEL)
    np.testing.assert_allclose(np.asarray(out_bf16c), np.asarray(ref),
                               rtol=5e-2, atol=5e-2)

    # Optional bf16 output (halves the dominant HBM writeback).
    out_bf16o = jax.block_until_ready(
        token_embedding(x, conv_weight, out_dtype=jnp.bfloat16))
    assert out_bf16o.dtype == jnp.bfloat16
    np.testing.assert_allclose(np.asarray(out_bf16o, dtype=np.float32),
                               np.asarray(ref), rtol=1e-1, atol=1e-1)

    # Non-multiple-of-128 d_model exercises the wrapper-side lane padding.
    D2 = 96
    conv_weight2 = _kaiming_normal_conv1d(kw2, D2, C_IN, 3)
    ref2 = jax.block_until_ready(_reference(x, conv_weight2))
    out2 = jax.block_until_ready(
        token_embedding(x, conv_weight2, compute_dtype=jnp.float32))
    assert out2.shape == (B, L, D2)
    np.testing.assert_allclose(np.asarray(out2), np.asarray(ref2),
                               rtol=2e-2, atol=2e-2)

    print("KERNEL_OK")
</pallas_src>

<mosaic_0001>
module attributes {stable_mosaic.version = 11 : i64} {
  func.func @_token_embed_gemm_kernel(%arg0: i32, %arg1: memref<32x12xf32, #tpu.memory_space<vmem>>, %arg2: memref<12x128xf32, #tpu.memory_space<vmem>>, %arg3: memref<32x128xf32, #tpu.memory_space<vmem>>) attributes {dimension_semantics = [#tpu.dimension_semantics<parallel>], iteration_bounds = array<i64: 1>, scalar_prefetch = 0 : i64, scratch_operands = 0 : i64, tpu.core_type = #tpu.core_type<tc>, window_params = [{transform_indices = @transform_0, window_bounds = array<i64: 32, 12>}, {pipeline_mode = #tpu.pipeline_mode<synchronous>, transform_indices = @transform_1, window_bounds = array<i64: 12, 128>}, {transform_indices = @transform_2, window_bounds = array<i64: 32, 128>}]} {
    %c0 = arith.constant 0 : index
    %c0_0 = arith.constant 0 : index
    %0 = vector.load %arg1[%c0, %c0_0] : memref<32x12xf32, #tpu.memory_space<vmem>>, vector<32x12xf32>
    %c0_1 = arith.constant 0 : index
    %c0_2 = arith.constant 0 : index
    %1 = vector.load %arg2[%c0_1, %c0_2] : memref<12x128xf32, #tpu.memory_space<vmem>>, vector<12x128xf32>
    %cst = arith.constant dense<0.000000e+00> : vector<32x128xf32>
    %2 = tpu.matmul %0, %1, %cst {dimension_numbers = #tpu.dot_dimension_numbers<[1], [0], [0], [1], [0, 0, 1, 1], [], []>} : vector<32x12xf32>, vector<12x128xf32>, vector<32x128xf32> -> vector<32x128xf32>
    %c0_3 = arith.constant 0 : index
    %c0_4 = arith.constant 0 : index
    %3 = vector.load %arg3[%c0_3, %c0_4] : memref<32x128xf32, #tpu.memory_space<vmem>>, vector<32x128xf32>
    tpu.vector_store %arg3[%c0_3, %c0_4], %2 {strides = array<i32>} : memref<32x128xf32, #tpu.memory_space<vmem>>, vector<32x128xf32>,
    return
  }
  func.func @transform_0(%arg0: i32) -> (i32, i32) {
    %c0_i32 = arith.constant 0 : i32
    %c0_i32_0 = arith.constant 0 : i32
    return %arg0, %c0_i32 : i32, i32
  }
  func.func @transform_1(%arg0: i32) -> (i32, i32) {
    %c0_i32 = arith.constant 0 : i32
    %c0_i32_0 = arith.constant 0 : i32
    %c0_i32_1 = arith.constant 0 : i32
    return %c0_i32, %c0_i32_0 : i32, i32
  }
  func.func @transform_2(%arg0: i32) -> (i32, i32) {
    %c0_i32 = arith.constant 0 : i32
    %c0_i32_0 = arith.constant 0 : i32
    return %arg0, %c0_i32 : i32, i32
  }
}

</mosaic_0001>

<bundles_post_ra>
// kernel: tpu_custom_call.1
= control target key start
LH: loop header
LB: loop body
LE: loop exit
PB: predicated region body
PF: predicated region fallthrough
CT: control target
= control target key end

     0   :  { %vm31_vm0 = vcmask 1043456   ;;  %vm18_vm1 = vcmask 97280   ;;  %s229_s0 = inlined_call_operand.vmem [shape: f32[32,12], index: 0, kind: input, shape index: {}]   ;;  %s230_s1 = inlined_call_operand.vmem [shape: f32[12,128], index: 1, kind: input, shape index: {}]   ;;  %s231_s2 = inlined_call_operand.hbm [shape: f32[32,128], index: 2, kind: output, shape index: {}]  }
   0x1   :  { %v17_v0 = vld [vmem:[%s230_s1 + $0x8] sm:$0xf]  ;;  %v16_v1 = vld [vmem:[%s230_s1] sm:$0xff]  ;;  %v14_v3 = vld [vmem:[%s229_s0 + $0x10] sm:$0xff] }
   0x2   :  { %151 = vmatprep.subr.msk.mxu0 %vm31_vm0, %v17_v0  ;;  %161 = vmatprep.subr.msk.mxu1 %vm31_vm0, %v17_v0  ;;  %v12_v2 = vld [vmem:[%s229_s0] sm:$0xff] }
   0x3   :  { %152 = vmatpush3.msk.msra.mxu0 %vm31_vm0, %v17_v0  ;;  %163 = vmatpush3.msk.msra.mxu1 %vm31_vm0, %v17_v0 }
   0x4   :  { %7 = vsyncpa [#allocation3], 0  ;;  %153 = vmatprep.subr.mxu0 %v16_v1  ;;  %162 = vmatprep.subr.mxu1 %v16_v1  ;;  %v13_v4 = vld [vmem:[%s229_s0 + $0x8] sm:$0xff]  ;;  %v15_v5 = vld [vmem:[%s229_s0 + $0x18] sm:$0xff]  ;;  %s190_s20 = smov [#allocation2]  }
   0x5   :  { %154 = vmatpush3.msra.mxu0 %v16_v1  ;;  %164 = vmatpush3.msra.mxu1 %v16_v1  ;;  %s129_s21 = sshll.u32 %s190_s20, 4  ;;  %s130_s21 = int_to_ptr.vmem [resolvable:$true] %s129_s21 }
   0x6   :  { %155 = vmatprep.mubr.msk.f32.mxu0 %vm18_vm1, %v12_v2  ;;  %158 = vmatprep.mubr.msk.f32.mxu1 %vm18_vm1, %v14_v3  ;;  %s168_s22 = scalar_lea.vmem %s130_s21, 512  ;;  %p173_p1 = scmp.lt.s32.totalorder %s130_s21, %s130_s21 }
   0x7   :  { %156 = vmatmul.mubr.msk.f32.vlgmr.msra.gmra.mxu0 %vm18_vm1, %v13_v4  ;;  %159 = vmatmul.mubr.msk.f32.vlgmr.msra.gmra.mxu1 %vm18_vm1, %v15_v5  ;;  %p169_p0 = scmp.ne.s32.totalorder %s130_s21, %s168_s22  ;;  %p174_p2 = scmp.lt.s32.totalorder %s168_s22, %s168_s22 }
   0x9   :  { %p175_p3 = por %p174_p2, %p173_p1 }
   0xb   :  { %p176_p4 = pnand %p175_p3, %p169_p0 }
  0xc7   :  { %v157_v6 = vpop.f32.mrf.mxu0  ;;  %v160_v7 = vpop.f32.mrf.mxu1 }
  0xc8   :  { %121 = vst [vmem:[#allocation2 + $0x8] sm:$0xff] %v157_v6  ;;  %123 = vst [vmem:[#allocation2 + $0x18] sm:$0xff] %v160_v7 }
  0xc9   :  { %v101_v8 = vpop.f32.mrf.mxu0  ;;  %v111_v9 = vpop.f32.mrf.mxu1 }
  0xca   :  { %120 = vst [vmem:[#allocation2] sm:$0xff] %v101_v8  ;;  %122 = vst [vmem:[#allocation2 + $0x10] sm:$0xff] %v111_v9 }
  0xcb   :  { %179 = shalt.err (!%p176_p4)
}
  0xcc   :  { %s191_s0 = smov 128   ;;  %s192_s23 = smov 8  }
  0xcd   :  { %135 = dma.vmem_to_hbm [thread:$0]  %s130_s21, 512, %s231_s2, [#allocation3], %s191_s0, %s191_s0, %s192_s23  }
  0xce   :  { %188 = dma.done.wait [#allocation3], 512  }
  0xcf   :  { %189 = vsyncadd [#allocation3], 4294966784 }
  0xd0   :  { %139 = vsyncpa [#allocation3], 1 }

</bundles_post_ra>
